<compile_context>
chip_gen: v6e
topology: v6e:2x2x1
jax: 0.10.0
libtpu: 0.0.40
codegen_flags: <defaults>
</compile_context>

<pallas_src>
import math

import jax
import jax.numpy as jnp
from jax.experimental import pallas as pl
from jax.experimental.pallas import tpu as pltpu


def _make_weighted_mean_kernel(m):
    def kernel(w_ref, *refs):
        # w_ref : SMEM (m,) float32 — already-softmaxed modality weights
        # refs  : m latent tiles (tr, lane) in VMEM, then the output tile
        x_refs = refs[:m]
        o_ref = refs[m]
        acc = x_refs[0][...].astype(jnp.float32) * w_ref[0]
        for j in range(1, m):  # m is tiny & static -> fully unrolled VPU FMAs
            acc = acc + x_refs[j][...].astype(jnp.float32) * w_ref[j]
        o_ref[...] = acc.astype(o_ref.dtype)

    return kernel


def _sublane_pack(itemsize):
    # Rows per fully-packed vreg sublane group: 8 (f32), 16 (bf16/f16), 32 (i8/fp8).
    return 8 * max(1, 4 // itemsize)


def _choose_layout(n, itemsize, block_target, min_grid_steps=2):
    """Pick (rows, lane, row_tile) for a flat size-n array.

    lane is a multiple of 128; rows = ceil(n / lane) (wrapper pads if needed);
    row_tile is a multiple of the dtype sublane pack chosen from block_target,
    with NO requirement that it divide rows (grid uses pl.cdiv).
    """
    pack = _sublane_pack(itemsize)

    lane = None
    # Prefer a lane width whose row count is fully sublane-packed.
    for cand in (1024, 512, 256, 128):
        if n % cand == 0 and (n // cand) % pack == 0:
            lane = cand
            break
    if lane is None:
        for cand in (1024, 512, 256, 128):
            if n % cand == 0:
                lane = cand
                break
    if lane is None:
        lane = 128  # wrapper pads the flat array up to a multiple of 128

    rows = -(-n // lane)  # ceil

    if rows <= pack:
        # Tiny array: one block spanning the full (short) row dim is allowed
        # (block dim == full array dim satisfies the (8,128) rule).
        return rows, lane, rows

    # Largest pack-multiple row tile that fits the byte target.
    tr = max(pack, (block_target // (lane * itemsize)) // pack * pack)

    # Guarantee at least `min_grid_steps` grid steps (v7x dual-TC sharding,
    # DMA/compute pipelining) whenever rows allows it.
    if -(-rows // tr) < min_grid_steps:
        tr = pack * (-(-(rows // min_grid_steps) // pack))
        tr = min(tr, pack * ((rows - 1) // pack))  # ensure tr < rows
        tr = max(tr, pack)

    return rows, lane, tr


def _vmem_params():
    """Per-generation (vmem_budget, target_block_bytes, vmem_limit_cap)."""
    vmem_cap = None
    try:
        info = pltpu.get_tpu_info()
        vmem_cap = getattr(info, "vmem_capacity_bytes", None)
    except Exception:
        vmem_cap = None

    if vmem_cap is not None and vmem_cap >= (100 << 20):
        # v5e / v6e: 128 MiB physical VMEM — bigger blocks, bigger budget.
        return 80 << 20, 4 << 20, int(vmem_cap - (24 << 20))
    # v7x (64 MiB per TC) or unknown: conservative.
    return 40 << 20, 2 << 20, 48 << 20


def weighted_mean_fuser(latents, raw_weights):
    """latents: list of M same-shape/dtype arrays; raw_weights: (M,) params."""
    m = len(latents)
    assert m >= 1
    assert raw_weights.shape == (m,)
    orig_shape = latents[0].shape
    dtype = latents[0].dtype
    for lt in latents:
        assert lt.shape == orig_shape and lt.dtype == dtype

    # softmax over the M modality weights — once, outside the grid loop.
    w = jax.nn.softmax(raw_weights.astype(jnp.float32))

    n = math.prod(orig_shape)
    itemsize = jnp.dtype(dtype).itemsize
    pack = _sublane_pack(itemsize)

    vmem_budget, target_block_bytes, limit_cap = _vmem_params()
    # (M inputs + 1 output) double-buffered blocks must fit the budget.
    max_block_bytes = max(pack * 128 * itemsize, vmem_budget // (2 * (m + 1)))
    block_target = min(target_block_bytes, max_block_bytes)

    rows, lane, tr = _choose_layout(n, itemsize, block_target)
    padded_n = rows * lane
    pad = padded_n - n

    if pad:
        # Awkward flat size: pad once to a dense (rows, lane) slab.
        # TODO(synk): fuse the pad into the kernel with masked edge loads
        # instead of a wrapper-side copy for very large awkward inputs.
        xs = [jnp.pad(lt.reshape(-1), (0, pad)).reshape(rows, lane) for lt in latents]
    else:
        # Pure metadata reshapes — no HBM copies, no stacking.
        xs = [lt.reshape(rows, lane) for lt in latents]

    grid = (pl.cdiv(rows, tr),)

    block_bytes = tr * lane * itemsize
    vmem_needed = 2 * (m + 1) * block_bytes
    vmem_limit = int(min(max(vmem_needed + (4 << 20), 32 << 20), limit_cap))

    out = pl.pallas_call(
        _make_weighted_mean_kernel(m),
        out_shape=jax.ShapeDtypeStruct((rows, lane), dtype),
        grid=grid,
        in_specs=[pl.BlockSpec(memory_space=pltpu.MemorySpace.SMEM)]
        + [pl.BlockSpec((tr, lane), lambda i: (i, 0)) for _ in range(m)],
        out_specs=pl.BlockSpec((tr, lane), lambda i: (i, 0)),
        compiler_params=pltpu.CompilerParams(
            dimension_semantics=("parallel",),
            vmem_limit_bytes=vmem_limit,
        ),
    )(w, *xs)

    if pad:
        return out.reshape(-1)[:n].reshape(orig_shape)
    return out.reshape(orig_shape)


def _reference(latents, raw_weights):
    w = jax.nn.softmax(raw_weights.astype(jnp.float32))
    stacked = jnp.stack([lt.astype(jnp.float32) for lt in latents], axis=-1)
    return jnp.sum(w * stacked, axis=-1)


if __name__ == "__main__":
    key = jax.random.PRNGKey(0)
    n_modality = 3
    B, C, H, W = 2, 4, 16, 16

    # Deterministic parameter init, matching nn.Parameter(torch.full((M,), 1/M))
    raw_weights = jnp.full((n_modality,), 1.0 / n_modality, dtype=jnp.float32)

    keys = jax.random.split(key, n_modality)
    latents = [jax.random.normal(k, (B, C, H, W), dtype=jnp.float32) for k in keys]

    out = weighted_mean_fuser(latents, raw_weights)
    out = jax.block_until_ready(out)

    ref = _reference(latents, raw_weights)
    assert out.shape == (B, C, H, W)
    assert jnp.allclose(out, ref, atol=1e-5, rtol=1e-5)

    # Extra check 1: awkward flat size (not a multiple of 128) exercises the
    # wrapper-side padding path instead of the old skinny-block fallback.
    shape2 = (2, 3, 17, 19)
    keys2 = jax.random.split(jax.random.PRNGKey(1), n_modality)
    latents2 = [jax.random.normal(k, shape2, dtype=jnp.float32) for k in keys2]
    out2 = jax.block_until_ready(weighted_mean_fuser(latents2, raw_weights))
    ref2 = _reference(latents2, raw_weights)
    assert out2.shape == shape2
    assert jnp.allclose(out2, ref2, atol=1e-5, rtol=1e-5)

    # Extra check 2: bf16 latents exercise the dtype-aware sublane packing.
    shape3 = (2, 8, 32, 128)
    keys3 = jax.random.split(jax.random.PRNGKey(2), n_modality)
    latents3 = [
        jax.random.normal(k, shape3, dtype=jnp.float32).astype(jnp.bfloat16)
        for k in keys3
    ]
    out3 = jax.block_until_ready(weighted_mean_fuser(latents3, raw_weights))
    ref3 = _reference(latents3, raw_weights).astype(jnp.bfloat16)
    assert out3.shape == shape3 and out3.dtype == jnp.bfloat16
    assert jnp.allclose(
        out3.astype(jnp.float32), ref3.astype(jnp.float32), atol=2e-2, rtol=2e-2
    )

    print("KERNEL_OK")
</pallas_src>

<mosaic_0001>
module attributes {stable_mosaic.version = 11 : i64} {
  func.func @kernel(%arg0: i32, %arg1: memref<3xf32, #tpu.memory_space<smem>>, %arg2: memref<8x256xf32, #tpu.memory_space<vmem>>, %arg3: memref<8x256xf32, #tpu.memory_space<vmem>>, %arg4: memref<8x256xf32, #tpu.memory_space<vmem>>, %arg5: memref<8x256xf32, #tpu.memory_space<vmem>>) attributes {dimension_semantics = [#tpu.dimension_semantics<parallel>], iteration_bounds = array<i64: 1>, scalar_prefetch = 0 : i64, scratch_operands = 0 : i64, tpu.core_type = #tpu.core_type<tc>, window_params = [{transform_indices = @transform_0, window_bounds = array<i64: 3>}, {transform_indices = @transform_1, window_bounds = array<i64: 8, 256>}, {transform_indices = @transform_2, window_bounds = array<i64: 8, 256>}, {transform_indices = @transform_3, window_bounds = array<i64: 8, 256>}, {transform_indices = @transform_4, window_bounds = array<i64: 8, 256>}]} {
    %c0 = arith.constant 0 : index
    %c0_0 = arith.constant 0 : index
    %0 = vector.load %arg2[%c0, %c0_0] : memref<8x256xf32, #tpu.memory_space<vmem>>, vector<8x256xf32>
    %c0_1 = arith.constant 0 : index
    %1 = memref.load %arg1[%c0_1] : memref<3xf32, #tpu.memory_space<smem>>
    %2 = vector.broadcast %1 : f32 to vector<8x256xf32>
    %3 = arith.mulf %0, %2 : vector<8x256xf32>
    %c0_2 = arith.constant 0 : index
    %c0_3 = arith.constant 0 : index
    %4 = vector.load %arg3[%c0_2, %c0_3] : memref<8x256xf32, #tpu.memory_space<vmem>>, vector<8x256xf32>
    %c1 = arith.constant 1 : index
    %5 = memref.load %arg1[%c1] : memref<3xf32, #tpu.memory_space<smem>>
    %6 = vector.broadcast %5 : f32 to vector<8x256xf32>
    %7 = arith.mulf %4, %6 : vector<8x256xf32>
    %8 = arith.addf %3, %7 : vector<8x256xf32>
    %c0_4 = arith.constant 0 : index
    %c0_5 = arith.constant 0 : index
    %9 = vector.load %arg4[%c0_4, %c0_5] : memref<8x256xf32, #tpu.memory_space<vmem>>, vector<8x256xf32>
    %c2 = arith.constant 2 : index
    %10 = memref.load %arg1[%c2] : memref<3xf32, #tpu.memory_space<smem>>
    %11 = vector.broadcast %10 : f32 to vector<8x256xf32>
    %12 = arith.mulf %9, %11 : vector<8x256xf32>
    %13 = arith.addf %8, %12 : vector<8x256xf32>
    %c0_6 = arith.constant 0 : index
    %c0_7 = arith.constant 0 : index
    %14 = vector.load %arg5[%c0_6, %c0_7] : memref<8x256xf32, #tpu.memory_space<vmem>>, vector<8x256xf32>
    tpu.vector_store %arg5[%c0_6, %c0_7], %13 {strides = array<i32>} : memref<8x256xf32, #tpu.memory_space<vmem>>, vector<8x256xf32>,
    return
  }
  func.func @transform_0(%arg0: i32) -> i32 {
    %c0_i32 = arith.constant 0 : i32
    %c0_i32_0 = arith.constant 0 : i32
    return %c0_i32 : i32
  }
  func.func @transform_1(%arg0: i32) -> (i32, i32) {
    %c0_i32 = arith.constant 0 : i32
    %c0_i32_0 = arith.constant 0 : i32
    return %arg0, %c0_i32 : i32, i32
  }
  func.func @transform_2(%arg0: i32) -> (i32, i32) {
    %c0_i32 = arith.constant 0 : i32
    %c0_i32_0 = arith.constant 0 : i32
    return %arg0, %c0_i32 : i32, i32
  }
  func.func @transform_3(%arg0: i32) -> (i32, i32) {
    %c0_i32 = arith.constant 0 : i32
    %c0_i32_0 = arith.constant 0 : i32
    return %arg0, %c0_i32 : i32, i32
  }
  func.func @transform_4(%arg0: i32) -> (i32, i32) {
    %c0_i32 = arith.constant 0 : i32
    %c0_i32_0 = arith.constant 0 : i32
    return %arg0, %c0_i32 : i32, i32
  }
}

</mosaic_0001>

<bundles_post_ra>
// kernel: tpu_custom_call.1
= control target key start
LH: loop header
LB: loop body
LE: loop exit
PB: predicated region body
PF: predicated region fallthrough
CT: control target
= control target key end

     0   :  { %9 = vsyncpa [#allocation5], 0  ;;  %s253_s0 = inlined_call_operand.hbm [shape: f32[3], index: 0, kind: input, shape index: {}]   ;;  %s254_s1 = inlined_call_operand.hbm [shape: f32[8,256], index: 1, kind: input, shape index: {}]   ;;  %s255_s2 = inlined_call_operand.hbm [shape: f32[8,256], index: 2, kind: input, shape index: {}]   ;;  %s256_s3 = inlined_call_operand.hbm [shape: f32[8,256], index: 3, kind: input, shape index: {}]   ;;  %s257_s4 = inlined_call_operand.hbm [shape: f32[8,256], index: 4, kind: output, shape index: {}]  }
   0x1   :  { %10 = vsyncpa [#allocation3], 0 }
   0x2   :  { %11 = vsyncpa [#allocation8], 0 }
   0x3   :  { %12 = vsyncpa [#allocation4], 0  ;;  %s208_s15 = smov [#allocation7]   ;;  %s209_s17 = smov [#allocation6]  }
   0x4   :  { %s37_s16 = sshll.u32 %s208_s15, 4  ;;  %s27_s18 = sshll.u32 %s209_s17, 4  ;;  %s38_s16 = int_to_ptr.vmem [resolvable:$true] %s37_s16  ;;  %s28_s18 = int_to_ptr.vmem [resolvable:$true] %s27_s18 }
   0x5   :  { %s120_s19 = scalar_lea.vmem %s38_s16, 256  ;;  %p125_p1 = scmp.lt.s32.totalorder %s38_s16, %s38_s16 }
   0x6   :  { %p121_p0 = scmp.ne.s32.totalorder %s38_s16, %s120_s19  ;;  %p126_p2 = scmp.lt.s32.totalorder %s120_s19, %s120_s19 }
   0x8   :  { %p127_p3 = por %p126_p2, %p125_p1 }
   0xa   :  { %p128_p4 = pnand %p127_p3, %p121_p0 }
   0xc   :  { %131 = shalt.err (!%p128_p4)
}
   0xd   :  { %40 = dma.hbm_to_vmem [thread:$0]  %s255_s2, 256, %s38_s16, [#allocation8]  }
   0xe   :  { %s210_s22 = smov [#allocation2]   ;;  %s148_s25 = scalar_lea.vmem %s28_s18, 256 }
   0xf   :  { %20 = dma.hbm_to_smem %s253_s0, 16, %s210_s22, [#allocation5]  }
  0x10   :  { %p149_p5 = scmp.ne.s32.totalorder %s28_s18, %s148_s25  ;;  %p153_p6 = scmp.lt.s32.totalorder %s28_s18, %s28_s18 }
  0x11   :  { %p154_p7 = scmp.lt.s32.totalorder %s148_s25, %s148_s25 }
  0x13   :  { %p155_p8 = por %p154_p7, %p153_p6 }
  0x15   :  { %p156_p9 = pnand %p155_p8, %p149_p5 }
  0x17   :  { %159 = shalt.err (!%p156_p9)
}
  0x18   :  { %30 = dma.hbm_to_vmem [thread:$0]  %s254_s1, 256, %s28_s18, [#allocation3]  }
  0x19   :  { %s211_s28 = smov [#allocation9]  }
  0x1a   :  { %s47_s29 = sshll.u32 %s211_s28, 4  ;;  %s48_s29 = int_to_ptr.vmem [resolvable:$true] %s47_s29 }
  0x1b   :  { %s168_s2 = scalar_lea.vmem %s48_s29, 256  ;;  %p173_p11 = scmp.lt.s32.totalorder %s48_s29, %s48_s29 }
  0x1c   :  { %p169_p10 = scmp.ne.s32.totalorder %s48_s29, %s168_s2  ;;  %p174_p12 = scmp.lt.s32.totalorder %s168_s2, %s168_s2 }
  0x1e   :  { %p175_p13 = por %p174_p12, %p173_p11 }
  0x20   :  { %p176_p0 = pnand %p175_p13, %p169_p10 }
  0x22   :  { %179 = shalt.err (!%p176_p0)
}
  0x23   :  { %50 = dma.hbm_to_vmem [thread:$0]  %s256_s3, 256, %s48_s29, [#allocation8]  }
  0x24   :  { %200 = dma.done.wait [#allocation5], 16  }
  0x25   :  { %201 = vsyncadd [#allocation5], 4294967280 }
  0x26   :  { %202 = dma.done.wait [#allocation3], 256  }
  0x27   :  { %203 = vsyncadd [#allocation3], 4294967040 }
  0x28   :  { %204 = dma.done.wait [#allocation8], 512  }
  0x29   :  { %205 = vsyncadd [#allocation8], 4294966784 }
  0x2a   :  { %63 = sfence }
  0x2b   :  { %s66_s1 = sld [smem:[#allocation2]]  ;;  %v64_v0 = vld [vmem:[#allocation6] sm:$0xff]  ;;  %v65_v1 = vld [vmem:[#allocation6 + $0x8] sm:$0xff]  ;;  %v70_v2 = vld [vmem:[#allocation7] sm:$0xff]  ;;  %s212_s3 = smov [#allocation10]  }
  0x2c   :  { %s105_s5 = sld [smem:[#allocation2 + $0x1]]  ;;  %v71_v3 = vld [vmem:[#allocation7 + $0x8] sm:$0xff]  ;;  %v78_v5 = vld [vmem:[#allocation9] sm:$0xff]  ;;  %v79_v6 = vld [vmem:[#allocation9 + $0x8] sm:$0xff]  ;;  %s94_s7 = sshll.u32 %s212_s3, 4  ;;  %s95_s7 = int_to_ptr.vmem [resolvable:$true] %s94_s7 }
  0x2d   :  { %s106_s6 = sld [smem:[#allocation2 + $0x2]]  ;;  %s180_s8 = scalar_lea.vmem %s95_s7, 256 }
  0x2e   :  { %p181_p1 = scmp.ne.s32.totalorder %s95_s7, %s180_s8  ;;  %p185_p2 = scmp.lt.s32.totalorder %s95_s7, %s95_s7 }
  0x2f   :  { %p186_p3 = scmp.lt.s32.totalorder %s180_s8, %s180_s8 }
  0x31   :  { %v67_v4 = vstv %s66_s1  ;;  %p187_p4 = por %p186_p3, %p185_p2 }
  0x32   :  { %v68_v7 = vmul.f32 %v67_v4, %v64_v0  ;;  %v73_v8 = vstv %s105_s5  ;;  %v69_v9 = vmul.f32 %v67_v4, %v65_v1 }
  0x33   :  { %v74_v10 = vmul.f32 %v73_v8, %v70_v2  ;;  %v81_v11 = vstv %s106_s6  ;;  %v75_v12 = vmul.f32 %v73_v8, %v71_v3  ;;  %p188_p5 = pnand %p187_p4, %p181_p1 }
  0x34   :  { %v82_v13 = vmul.f32 %v81_v11, %v78_v5  ;;  %v83_v14 = vmul.f32 %v81_v11, %v79_v6 }
  0x35   :  { %v76_v15 = vadd.f32 %v74_v10, %v68_v7  ;;  %v77_v16 = vadd.f32 %v75_v12, %v69_v9 }
  0x37   :  { %v84_v17 = vadd.f32 %v82_v13, %v76_v15  ;;  %v85_v18 = vadd.f32 %v83_v14, %v77_v16 }
  0x39   :  { %86 = vst [vmem:[#allocation10] sm:$0xff] %v84_v17  ;;  %87 = vst [vmem:[#allocation10 + $0x8] sm:$0xff] %v85_v18 }
  0x3a   :  { %191 = shalt.err (!%p188_p5)
}
  0x3b   :  { %97 = dma.vmem_to_hbm [thread:$0]  %s95_s7, 256, %s257_s4, [#allocation4]  }
  0x3c   :  { %206 = dma.done.wait [#allocation4], 256  }
  0x3d   :  { %207 = vsyncadd [#allocation4], 4294967040 }
  0x3e   :  { %101 = vsyncpa [#allocation3], 1 }
  0x3f   :  { %102 = vsyncpa [#allocation8], 1 }
  0x40   :  { %103 = vsyncpa [#allocation4], 1 }
  0x41   :  { %104 = vsyncpa [#allocation5], 1 }

</bundles_post_ra>
